<compile_context>
chip_gen: v5e
topology: v5e:2x2
jax: 0.10.0
libtpu: 0.0.40
codegen_flags: <defaults>
</compile_context>

<pallas_src>
import jax
import jax.numpy as jnp
from jax.experimental import pallas as pl
from jax.experimental.pallas import tpu as pltpu

SUBLANE = 8


def _cdiv(a, b):
    return -(-a // b)


def _round_up(n, m):
    return _cdiv(n, m) * m


# ----------------------------- kernel ---------------------------------------


def mitigation_kernel(x_ref, w1_ref, b1_ref, w2_ref, b2_ref, w3_ref, b3_ref,
                      out_ref):
    # f32 -> bf16 cast happens in VMEM (no extra HBM pass over x).
    x = x_ref[...].astype(jnp.bfloat16)

    # ---- layer 1: Linear(input_dim -> hidden) + ReLU (bf16 MXU, f32 acc) ----
    h1 = jnp.dot(x, w1_ref[...], preferred_element_type=jnp.float32)
    h1 = jnp.maximum(h1 + b1_ref[...], 0.0)
    # Dropout(0.2) -> identity in eval mode.

    # ---- layer 2: Linear(hidden -> hidden) + ReLU ----
    h2 = jnp.dot(h1.astype(jnp.bfloat16), w2_ref[...],
                 preferred_element_type=jnp.float32)
    h2 = jnp.maximum(h2 + b2_ref[...], 0.0)
    # Dropout(0.2) -> identity in eval mode.

    # ---- layer 3: Linear(hidden -> 4) + Softmax over the 4 classes ----
    logits = jnp.dot(h2.astype(jnp.bfloat16), w3_ref[...],
                     preferred_element_type=jnp.float32)
    logits = logits + b3_ref[...]

    m = jnp.max(logits, axis=-1, keepdims=True)
    e = jnp.exp(logits - m)
    denom = jnp.sum(e, axis=-1, keepdims=True)
    r = pl.reciprocal(denom, approx=True)   # EUP slot (otherwise idle)
    r = r * (2.0 - denom * r)               # one Newton step -> ~f32 accuracy
    out_ref[...] = (e * r).astype(out_ref.dtype)


# ----------------------------- wrapper ---------------------------------------


def _prepare_params(params):
    """Cast weights to bf16 (for the MXU) and biases to f32 row vectors."""
    w1, b1, w2, b2, w3, b3 = params
    return (w1.astype(jnp.bfloat16), b1.reshape(1, -1).astype(jnp.float32),
            w2.astype(jnp.bfloat16), b2.reshape(1, -1).astype(jnp.float32),
            w3.astype(jnp.bfloat16), b3.reshape(1, -1).astype(jnp.float32))


def mitigation_network(x, params, *, tile_b=2048):
    """Fused MLP forward. x: [batch, input_dim] float32 -> [batch, 4] float32."""
    w1, b1, w2, b2, w3, b3 = _prepare_params(params)
    in_dim, hid = w1.shape
    out_dim = w3.shape[1]
    batch = x.shape[0]

    # ---- tile / grid selection ------------------------------------------------
    nb = max(1, _cdiv(batch, tile_b))
    if batch >= 2 * SUBLANE:
        # >= 2 even grid steps so "parallel" can shard across both TCs (v7x).
        nb = max(nb, 2)
        if nb % 2:
            nb += 1
    tb = _round_up(_cdiv(batch, nb), SUBLANE)   # padding bounded by < 8*nb rows
    batch_p = nb * tb

    # Pad batch rows only when needed (no K padding, no dtype pass over x).
    if batch_p != batch:
        xp = jnp.zeros((batch_p, in_dim), x.dtype).at[:batch, :].set(x)
    else:
        xp = x

    flops = 2 * batch_p * (in_dim * hid + hid * hid + hid * out_dim)
    bytes_accessed = (
        xp.size * xp.dtype.itemsize                       # x in
        + (w1.size + w2.size + w3.size) * 2               # bf16 weights
        + (b1.size + b2.size + b3.size) * 4               # f32 biases
        + batch_p * out_dim * 4                           # f32 output
    )

    out = pl.pallas_call(
        mitigation_kernel,
        out_shape=jax.ShapeDtypeStruct((batch_p, out_dim), jnp.float32),
        grid_spec=pltpu.PrefetchScalarGridSpec(
            num_scalar_prefetch=0,
            grid=(nb,),
            in_specs=[
                pl.BlockSpec((tb, in_dim), lambda i: (i, 0)),    # x  (pipelined)
                pl.BlockSpec((in_dim, hid), lambda i: (0, 0)),   # w1 (resident)
                pl.BlockSpec((1, hid), lambda i: (0, 0)),        # b1
                pl.BlockSpec((hid, hid), lambda i: (0, 0)),      # w2
                pl.BlockSpec((1, hid), lambda i: (0, 0)),        # b2
                pl.BlockSpec((hid, out_dim), lambda i: (0, 0)),  # w3
                pl.BlockSpec((1, out_dim), lambda i: (0, 0)),    # b3
            ],
            out_specs=pl.BlockSpec((tb, out_dim), lambda i: (i, 0)),
        ),
        compiler_params=pltpu.CompilerParams(
            dimension_semantics=("parallel",)),          # dual-TC on v7x
        cost_estimate=pl.CostEstimate(
            flops=flops,
            transcendentals=batch_p * out_dim,
            bytes_accessed=bytes_accessed),
    )(xp, w1, b1, w2, b2, w3, b3)

    return out[:batch] if batch_p != batch else out


# ----------------------------- params / reference ----------------------------


def init_params(key, input_dim, hidden_dim=128):
    """Deterministic synthetic parameters (PyTorch-like uniform init ranges)."""
    ks = jax.random.split(key, 6)

    def lin(kw, kb, fan_in, fan_out):
        bound = 1.0 / jnp.sqrt(fan_in)
        # stored as [in, out] so the kernel computes x @ W + b (== PyTorch x @ W.T)
        w = jax.random.uniform(kw, (fan_in, fan_out), jnp.float32, -bound, bound)
        b = jax.random.uniform(kb, (1, fan_out), jnp.float32, -bound, bound)
        return w, b

    w1, b1 = lin(ks[0], ks[1], input_dim, hidden_dim)
    w2, b2 = lin(ks[2], ks[3], hidden_dim, hidden_dim)
    w3, b3 = lin(ks[4], ks[5], hidden_dim, 4)
    return (w1, b1, w2, b2, w3, b3)


def _reference(x, params):
    """Pure-JAX forward with the same bf16-matmul / f32-accumulate precision."""
    w1, b1, w2, b2, w3, b3 = params
    h1 = jnp.maximum(
        jnp.dot(x.astype(jnp.bfloat16), w1.astype(jnp.bfloat16),
                preferred_element_type=jnp.float32) + b1, 0.0)
    h2 = jnp.maximum(
        jnp.dot(h1.astype(jnp.bfloat16), w2.astype(jnp.bfloat16),
                preferred_element_type=jnp.float32) + b2, 0.0)
    logits = jnp.dot(h2.astype(jnp.bfloat16), w3.astype(jnp.bfloat16),
                     preferred_element_type=jnp.float32) + b3
    return jax.nn.softmax(logits, axis=-1)


# ----------------------------- demo -------------------------------------------

if __name__ == "__main__":
    batch = 8
    input_dim = 32
    hidden_dim = 128

    key = jax.random.PRNGKey(0)
    k_x, k_p = jax.random.split(key)

    x = jax.random.normal(k_x, (batch, input_dim), dtype=jnp.float32)
    params = init_params(k_p, input_dim, hidden_dim)

    out = mitigation_network(x, params)
    out = jax.block_until_ready(out)

    assert out.shape == (batch, 4)

    # sanity: softmax rows sum to 1
    row_sums = jnp.sum(out, axis=-1)
    assert bool(jnp.allclose(row_sums, 1.0, atol=1e-4))

    # sanity: matches a pure-JAX reference at the same matmul precision
    ref = _reference(x, params)
    assert bool(jnp.allclose(out, ref, atol=2e-3, rtol=2e-3))

    print("KERNEL_OK")
</pallas_src>

<mosaic_0001>
module attributes {stable_mosaic.version = 11 : i64} {
  func.func @mitigation_kernel(%arg0: i32, %arg1: memref<8x32xf32, #tpu.memory_space<vmem>>, %arg2: memref<32x128xbf16, #tpu.memory_space<vmem>>, %arg3: memref<1x128xf32, #tpu.memory_space<vmem>>, %arg4: memref<128x128xbf16, #tpu.memory_space<vmem>>, %arg5: memref<1x128xf32, #tpu.memory_space<vmem>>, %arg6: memref<128x4xbf16, #tpu.memory_space<vmem>>, %arg7: memref<1x4xf32, #tpu.memory_space<vmem>>, %arg8: memref<8x4xf32, #tpu.memory_space<vmem>>) attributes {dimension_semantics = [#tpu.dimension_semantics<parallel>], iteration_bounds = array<i64: 1>, scalar_prefetch = 0 : i64, scratch_operands = 0 : i64, tpu.core_type = #tpu.core_type<tc>, window_params = [{transform_indices = @transform_0, window_bounds = array<i64: 8, 32>}, {pipeline_mode = #tpu.pipeline_mode<synchronous>, transform_indices = @transform_1, window_bounds = array<i64: 32, 128>}, {pipeline_mode = #tpu.pipeline_mode<synchronous>, transform_indices = @transform_2, window_bounds = array<i64: 1, 128>}, {pipeline_mode = #tpu.pipeline_mode<synchronous>, transform_indices = @transform_3, window_bounds = array<i64: 128, 128>}, {pipeline_mode = #tpu.pipeline_mode<synchronous>, transform_indices = @transform_4, window_bounds = array<i64: 1, 128>}, {pipeline_mode = #tpu.pipeline_mode<synchronous>, transform_indices = @transform_5, window_bounds = array<i64: 128, 4>}, {pipeline_mode = #tpu.pipeline_mode<synchronous>, transform_indices = @transform_6, window_bounds = array<i64: 1, 4>}, {transform_indices = @transform_7, window_bounds = array<i64: 8, 4>}]} {
    %c0 = arith.constant 0 : index
    %c0_0 = arith.constant 0 : index
    %0 = vector.load %arg1[%c0, %c0_0] : memref<8x32xf32, #tpu.memory_space<vmem>>, vector<8x32xf32>
    %1 = arith.truncf %0 : vector<8x32xf32> to vector<8x32xbf16>
    %c0_1 = arith.constant 0 : index
    %c0_2 = arith.constant 0 : index
    %2 = vector.load %arg2[%c0_1, %c0_2] : memref<32x128xbf16, #tpu.memory_space<vmem>>, vector<32x128xbf16>
    %cst = arith.constant dense<0.000000e+00> : vector<8x128xf32>
    %3 = tpu.matmul %1, %2, %cst {dimension_numbers = #tpu.dot_dimension_numbers<[1], [0], [0], [1], [0, 0, 1, 1], [], []>} : vector<8x32xbf16>, vector<32x128xbf16>, vector<8x128xf32> -> vector<8x128xf32>
    %c0_3 = arith.constant 0 : index
    %c0_4 = arith.constant 0 : index
    %4 = vector.load %arg3[%c0_3, %c0_4] : memref<1x128xf32, #tpu.memory_space<vmem>>, vector<1x128xf32>
    %5 = vector.broadcast %4 : vector<1x128xf32> to vector<8x128xf32>
    %6 = arith.addf %3, %5 : vector<8x128xf32>
    %cst_5 = arith.constant 0.000000e+00 : f32
    %7 = vector.broadcast %cst_5 : f32 to vector<8x128xf32>
    %8 = arith.maximumf %6, %7 : vector<8x128xf32>
    %9 = arith.truncf %8 : vector<8x128xf32> to vector<8x128xbf16>
    %c0_6 = arith.constant 0 : index
    %c0_7 = arith.constant 0 : index
    %10 = vector.load %arg4[%c0_6, %c0_7] : memref<128x128xbf16, #tpu.memory_space<vmem>>, vector<128x128xbf16>
    %cst_8 = arith.constant dense<0.000000e+00> : vector<8x128xf32>
    %11 = tpu.matmul %9, %10, %cst_8 {dimension_numbers = #tpu.dot_dimension_numbers<[1], [0], [0], [1], [0, 0, 1, 1], [], []>} : vector<8x128xbf16>, vector<128x128xbf16>, vector<8x128xf32> -> vector<8x128xf32>
    %c0_9 = arith.constant 0 : index
    %c0_10 = arith.constant 0 : index
    %12 = vector.load %arg5[%c0_9, %c0_10] : memref<1x128xf32, #tpu.memory_space<vmem>>, vector<1x128xf32>
    %13 = vector.broadcast %12 : vector<1x128xf32> to vector<8x128xf32>
    %14 = arith.addf %11, %13 : vector<8x128xf32>
    %cst_11 = arith.constant 0.000000e+00 : f32
    %15 = vector.broadcast %cst_11 : f32 to vector<8x128xf32>
    %16 = arith.maximumf %14, %15 : vector<8x128xf32>
    %17 = arith.truncf %16 : vector<8x128xf32> to vector<8x128xbf16>
    %c0_12 = arith.constant 0 : index
    %c0_13 = arith.constant 0 : index
    %18 = vector.load %arg6[%c0_12, %c0_13] : memref<128x4xbf16, #tpu.memory_space<vmem>>, vector<128x4xbf16>
    %cst_14 = arith.constant dense<0.000000e+00> : vector<8x4xf32>
    %19 = tpu.matmul %17, %18, %cst_14 {dimension_numbers = #tpu.dot_dimension_numbers<[1], [0], [0], [1], [0, 0, 1, 1], [], []>} : vector<8x128xbf16>, vector<128x4xbf16>, vector<8x4xf32> -> vector<8x4xf32>
    %c0_15 = arith.constant 0 : index
    %c0_16 = arith.constant 0 : index
    %20 = vector.load %arg7[%c0_15, %c0_16] : memref<1x4xf32, #tpu.memory_space<vmem>>, vector<1x4xf32>
    %21 = vector.broadcast %20 : vector<1x4xf32> to vector<8x4xf32>
    %22 = arith.addf %19, %21 : vector<8x4xf32>
    %cst_17 = arith.constant dense<0xFF800000> : vector<8xf32>
    %23 = vector.multi_reduction <maximumf>, %22, %cst_17 [1] : vector<8x4xf32> to vector<8xf32>
    %24 = vector.shape_cast %23 : vector<8xf32> to vector<8x1xf32>
    %25 = vector.broadcast %24 : vector<8x1xf32> to vector<8x4xf32>
    %26 = arith.subf %22, %25 : vector<8x4xf32>
    %27 = math.exp %26 : vector<8x4xf32>
    %cst_18 = arith.constant dense<0.000000e+00> : vector<8xf32>
    %28 = vector.multi_reduction <add>, %27, %cst_18 [1] : vector<8x4xf32> to vector<8xf32>
    %29 = vector.shape_cast %28 : vector<8xf32> to vector<8x1xf32>
    %30 = tpu.reciprocal %29 {approx = true} : vector<8x1xf32> -> vector<8x1xf32>
    %31 = arith.mulf %29, %30 : vector<8x1xf32>
    %cst_19 = arith.constant 2.000000e+00 : f32
    %32 = vector.broadcast %cst_19 : f32 to vector<8x1xf32>
    %33 = arith.subf %32, %31 : vector<8x1xf32>
    %34 = arith.mulf %30, %33 : vector<8x1xf32>
    %35 = vector.broadcast %34 : vector<8x1xf32> to vector<8x4xf32>
    %36 = arith.mulf %27, %35 : vector<8x4xf32>
    %c0_20 = arith.constant 0 : index
    %c0_21 = arith.constant 0 : index
    %37 = vector.load %arg8[%c0_20, %c0_21] : memref<8x4xf32, #tpu.memory_space<vmem>>, vector<8x4xf32>
    tpu.vector_store %arg8[%c0_20, %c0_21], %36 {strides = array<i32>} : memref<8x4xf32, #tpu.memory_space<vmem>>, vector<8x4xf32>,
    return
  }
  func.func @transform_0(%arg0: i32) -> (i32, i32) {
    %c0_i32 = arith.constant 0 : i32
    %c0_i32_0 = arith.constant 0 : i32
    return %arg0, %c0_i32 : i32, i32
  }
  func.func @transform_1(%arg0: i32) -> (i32, i32) {
    %c0_i32 = arith.constant 0 : i32
    %c0_i32_0 = arith.constant 0 : i32
    %c0_i32_1 = arith.constant 0 : i32
    return %c0_i32, %c0_i32_0 : i32, i32
  }
  func.func @transform_2(%arg0: i32) -> (i32, i32) {
    %c0_i32 = arith.constant 0 : i32
    %c0_i32_0 = arith.constant 0 : i32
    %c0_i32_1 = arith.constant 0 : i32
    return %c0_i32, %c0_i32_0 : i32, i32
  }
  func.func @transform_3(%arg0: i32) -> (i32, i32) {
    %c0_i32 = arith.constant 0 : i32
    %c0_i32_0 = arith.constant 0 : i32
    %c0_i32_1 = arith.constant 0 : i32
    return %c0_i32, %c0_i32_0 : i32, i32
  }
  func.func @transform_4(%arg0: i32) -> (i32, i32) {
    %c0_i32 = arith.constant 0 : i32
    %c0_i32_0 = arith.constant 0 : i32
    %c0_i32_1 = arith.constant 0 : i32
    return %c0_i32, %c0_i32_0 : i32, i32
  }
  func.func @transform_5(%arg0: i32) -> (i32, i32) {
    %c0_i32 = arith.constant 0 : i32
    %c0_i32_0 = arith.constant 0 : i32
    %c0_i32_1 = arith.constant 0 : i32
    return %c0_i32, %c0_i32_0 : i32, i32
  }
  func.func @transform_6(%arg0: i32) -> (i32, i32) {
    %c0_i32 = arith.constant 0 : i32
    %c0_i32_0 = arith.constant 0 : i32
    %c0_i32_1 = arith.constant 0 : i32
    return %c0_i32, %c0_i32_0 : i32, i32
  }
  func.func @transform_7(%arg0: i32) -> (i32, i32) {
    %c0_i32 = arith.constant 0 : i32
    %c0_i32_0 = arith.constant 0 : i32
    return %arg0, %c0_i32 : i32, i32
  }
}

</mosaic_0001>

<bundles_post_ra>
// kernel: tpu_custom_call.1
= control target key start
LH: loop header
LB: loop body
LE: loop exit
PB: predicated region body
PF: predicated region fallthrough
CT: control target
= control target key end

     0   :  { %12 = vsyncpa [#allocation3], 0  ;;  %s551_s0 = inlined_call_operand.hbm [shape: f32[8,32], index: 0, kind: input, shape index: {}]   ;;  %s552_s1 = inlined_call_operand.hbm [shape: bf16[32,128], index: 1, kind: input, shape index: {}]   ;;  %s553_s2 = inlined_call_operand.vmem [shape: f32[1,128], index: 2, kind: input, shape index: {}]   ;;  %s554_s3 = inlined_call_operand.vmem [shape: bf16[128,128], index: 3, kind: input, shape index: {}]   ;;  %s555_s4 = inlined_call_operand.vmem [shape: f32[1,128], index: 4, kind: input, shape index: {}]   ;;  %s556_s5 = inlined_call_operand.vmem [shape: bf16[128,4], index: 5, kind: input, shape index: {}]   ;;  %s557_s6 = inlined_call_operand.vmem [shape: f32[1,4], index: 6, kind: input, shape index: {}]   ;;  %s558_s7 = inlined_call_operand.vmem [shape: f32[8,4], index: 7, kind: output, shape index: {}]  }
   0x1   :  { %s19_s26 = sshll.u32 %s551_s0, 4  ;;  %s20_s26 = int_to_ptr.hbm [resolvable:$true] %s19_s26 }
   0x2   :  { %13 = vsyncpa [#allocation5], 0  ;;  %s438_s27 = smov [#allocation2]   ;;  %s29_s8 = sshll.u32 %s552_s1, 4  ;;  %s30_s8 = int_to_ptr.hbm [resolvable:$true] %s29_s8 }
   0x3   :  { %s21_s28 = sshll.u32 %s438_s27, 4  ;;  %s439_s9 = smov [#allocation4]   ;;  %s22_s28 = int_to_ptr.vmem [resolvable:$true] %s21_s28 }
   0x4   :  { %24 = dma.hbm_to_vmem [thread:$0]  %s20_s26, 128, %s22_s28, [#allocation3]  }
   0x5   :  { %s31_s10 = sshll.u32 %s439_s9, 4  ;;  %s440_s11 = smov 64   ;;  %s32_s10 = int_to_ptr.vmem [resolvable:$true] %s31_s10 }
   0x6   :  { %s441_s12 = smov 4  }
   0x7   :  { %37 = dma.hbm_to_vmem [thread:$0]  %s30_s8, 256, %s32_s10, [#allocation5], %s440_s11, %s440_s11, %s441_s12  }
   0x8   :  { %434 = dma.done.wait [#allocation3], 128  }
   0x9   :  { %435 = vsyncadd [#allocation3], 4294967168 }
   0xa   :  { %436 = dma.done.wait [#allocation5], 256  }
   0xb   :  { %437 = vsyncadd [#allocation5], 4294967040  ;;  %v358_v0 = vld [vmem:[#allocation4 + $0x8] sm:$0xff]  ;;  %v366_v1 = vld [vmem:[%s554_s3 + $0x38] sm:$0xff]  ;;  %vm79_vm0 = vcmask 261120   ;;  %vm262_vm1 = vcmask 31744  }
   0xc   :  { %89 = vmatpush.bf16.msra.mxu0 %v358_v0  ;;  %v357_v2 = vld [vmem:[#allocation4] sm:$0xff]  ;;  %v57_v3 = vld [vmem:[#allocation2] sm:$0xff]  ;;  %166 = vmatpush.bf16.msra.mxu1 %v366_v1  ;;  %v365_v4 = vld [vmem:[%s554_s3 + $0x30] sm:$0xff] }
   0xd   :  { %v58_v5 = vpack.c.bf16 %v57_v3, %v57_v3  ;;  %v364_v6 = vld [vmem:[%s554_s3 + $0x28] sm:$0xff]  ;;  %v363_v7 = vld [vmem:[%s554_s3 + $0x20] sm:$0xff]  ;;  %v362_v8 = vld [vmem:[%s554_s3 + $0x18] sm:$0xff] }
   0xe   :  { %v361_v9 = vld [vmem:[%s554_s3 + $0x10] sm:$0xff]  ;;  %v360_v10 = vld [vmem:[%s554_s3 + $0x8] sm:$0xff]  ;;  %v359_v11 = vld [vmem:[%s554_s3] sm:$0xff] }
   0xf   :  { %v374_v12 = vld [vmem:[%s556_s5 + $0x38] sm:$0xff]  ;;  %v373_v13 = vld [vmem:[%s556_s5 + $0x30] sm:$0xff]  ;;  %v372_v14 = vld [vmem:[%s556_s5 + $0x28] sm:$0xff] }
  0x10   :  { %90 = vmatpush.bf16.msra.mxu0 %v357_v2  ;;  %167 = vmatpush.bf16.msra.mxu1 %v365_v4  ;;  %v371_v15 = vld [vmem:[%s556_s5 + $0x20] sm:$0xff]  ;;  %v370_v16 = vld [vmem:[%s556_s5 + $0x18] sm:$0xff]  ;;  %v369_v17 = vld [vmem:[%s556_s5 + $0x10] sm:$0xff] }
  0x11   :  { %249 = vmatpush.bf16.msra.mxu2 %v374_v12  ;;  %v379_v18 = vld [vmem:[%s553_s2] ss:$0 sm:$0xff]  ;;  %v368_v24 = vld [vmem:[%s556_s5 + $0x8] sm:$0xff] }
  0x12   :  { %v367_v25 = vld [vmem:[%s556_s5] sm:$0xff] }
  0x13   :  { %292 = vmatmul.msk.bf16.vlgmr.msra.gmra.mxu0 %vm79_vm0, %v58_v5  ;;  %v380_v26 = vld [vmem:[%s555_s4] ss:$0 sm:$0xff] }
  0x14   :  { %168 = vmatpush.bf16.msra.mxu1 %v364_v6  ;;  %v381_v32 = vld [vmem:[%s557_s6] ss:$0 sm:$0xff] }
  0x15   :  { %250 = vmatpush.bf16.msra.mxu2 %v373_v13 }
  0x18   :  { %169 = vmatpush.bf16.msra.mxu1 %v363_v7 }
  0x19   :  { %251 = vmatpush.bf16.msra.mxu2 %v372_v14 }
  0x1c   :  { %170 = vmatpush.bf16.msra.mxu1 %v362_v8 }
  0x1d   :  { %252 = vmatpush.bf16.msra.mxu2 %v371_v15 }
  0x20   :  { %171 = vmatpush.bf16.msra.mxu1 %v361_v9 }
  0x21   :  { %253 = vmatpush.bf16.msra.mxu2 %v370_v16 }
  0x24   :  { %172 = vmatpush.bf16.msra.mxu1 %v360_v10 }
  0x25   :  { %254 = vmatpush.bf16.msra.mxu2 %v369_v17 }
  0x28   :  { %173 = vmatpush.bf16.msra.mxu1 %v359_v11 }
  0x29   :  { %255 = vmatpush.bf16.msra.mxu2 %v368_v24 }
  0x2d   :  { %256 = vmatpush.bf16.msra.mxu2 %v367_v25 }
  0x90   :  { %v92_v19 = vpop.f32.mrf.mxu0 }
  0x91   :  { %v93_v20 = vadd.f32 %v379_v18, %v92_v19 }
  0x93   :  { %v96_v21 = vmax.f32 %v93_v20, 0.0 }
  0x95   :  { %v97_v22 = vpack.c.bf16 %v96_v21, %v96_v21 }
  0x97   :  { %174 = vmatmul.bf16.vlgmr.msra.gmra.mxu1 %v97_v22 }
  0x98   :  { %v94_v23 = vpop.f32.mrf.mxu0 }
 0x114   :  { %v175_v27 = vpop.f32.mrf.mxu1 }
 0x115   :  { %v176_v28 = vadd.f32 %v380_v26, %v175_v27 }
 0x117   :  { %v179_v29 = vmax.f32 %v176_v28, 0.0 }
 0x119   :  { %v180_v30 = vpack.c.bf16 %v179_v29, %v179_v29 }
 0x11b   :  { %257 = vmatmul.bf16.vlgmr.msra.gmra.mxu2 %v180_v30 }
 0x11c   :  { %v177_v31 = vpop.f32.mrf.mxu1 }
 0x19e   :  { %v258_v33 = vpop.f32.mrf.mxu2 }
 0x19f   :  { %v259_v34 = vadd.f32 %v381_v32, %v258_v33 }
 0x1a1   :  { %v263_v35 = vsel %vm262_vm1, %v259_v34, -inf }
 0x1a2   :  { %264 = vmax.xlane.f32.xlu0 %v263_v35 }
 0x1a6   :  { %v260_v36 = vpop.f32.mrf.mxu2 }
 0x215   :  { %v265_v37 = vpop.xlane.xlu0 %264 }
 0x216   :  { %v266_v38 = vsub.f32 %v259_v34, %v265_v37 }
 0x218   :  { %v267_v39 = vmul.f32 1.442695, %v266_v38 }
 0x21a   :  { %382 = vpow2.f32 %v267_v39 }
 0x220   :  { %v383_v40 = vpop.eup %382 }
 0x221   :  { %v269_v41 = vsel %vm262_vm1, %v383_v40, 0.0 }
 0x222   :  { %270 = vadd.xlane.f32.xlu0 %v269_v41 }
 0x295   :  { %v271_v42 = vpop.xlane.xlu0 %270 }
 0x296   :  { %384 = vrcp.f32 %v271_v42 }
 0x29c   :  { %v385_v43 = vpop.eup %384 }
 0x29d   :  { %v273_v44 = vmul.f32 %v385_v43, %v271_v42 }
 0x29f   :  { %v274_v45 = vsub.f32 2.0, %v273_v44 }
 0x2a1   :  { %v275_v46 = vmul.f32 %v385_v43, %v274_v45 }
 0x2a3   :  { %v276_v47 = vmul.f32 %v383_v40, %v275_v46 }
 0x2a5   :  { %277 = vst.msk [vmem:[%s558_s7] sm:$0xff] %vm262_vm1, %v276_v47 }
 0x2a6   :  { %282 = vsyncpa [#allocation3], 1 }
 0x2a7   :  { %283 = vsyncpa [#allocation5], 1 }

</bundles_post_ra>
